<compile_context>
chip_gen: v6e
topology: v6e:2x2x1
jax: 0.10.0
libtpu: 0.0.40
codegen_flags: <defaults>
</compile_context>

<pallas_src>
import math

import jax
import jax.numpy as jnp
from jax.experimental import pallas as pl
from jax.experimental.pallas import tpu as pltpu


def _round_up(n, m):
    return ((n + m - 1) // m) * m


def _pick_tile(B, block_batch, sublane, split_threshold=256):
    """Pick (batch_tile, padded_batch). Splits a single big tile in two so the
    'parallel' grid axis can use v7x's second TensorCore; tiny batches stay
    single-tile (one grid step, no megacore split overhead)."""
    tb = min(_round_up(B, sublane), _round_up(block_batch, sublane))
    if _round_up(B, sublane) <= tb and B >= split_threshold:
        tb = _round_up(pl.cdiv(B, 2), sublane)
    b_pad = _round_up(B, tb)
    return tb, b_pad


# ---------------------------------------------------------------------------
# Canonical parameter layout: pad/cast ONCE, not on every forward call.
# ---------------------------------------------------------------------------
def prepare_params(w1, b1, w2, b2, *, weight_dtype=None):
    """w1: [S, H], b1: [1, H], w2: [H, A], b2: [1, A] (transposed vs. PyTorch).

    Pads the action axis of W2/b2 to a full 128-lane multiple (lane-dense
    output store) and optionally casts the weights to `weight_dtype`
    (e.g. bf16 for the MXU fast path). Biases stay float32."""
    S, H = w1.shape
    A = w2.shape[1]
    a_pad = _round_up(max(A, 128), 128)
    if a_pad != A:
        w2 = jnp.pad(w2, ((0, 0), (0, a_pad - A)))
        b2 = jnp.pad(b2, ((0, 0), (0, a_pad - A)))
    if weight_dtype is not None:
        w1 = w1.astype(weight_dtype)
        w2 = w2.astype(weight_dtype)
    return {
        "w1": w1,
        "b1": b1.astype(jnp.float32).reshape(1, H),
        "w2": w2,
        "b2": b2.astype(jnp.float32).reshape(1, a_pad),
        "action_size": A,
    }


# ---------------------------------------------------------------------------
# Dense path: x is an arbitrary [B, S] float tensor (general nn.Linear semantics).
# ---------------------------------------------------------------------------
def dqn_kernel(x_ref, w1_ref, b1_ref, w2_ref, b2_ref, o_ref):
    # fc1: [TB, S] @ [S, H]  (operands in weight dtype, f32 accumulation)
    h = jnp.dot(
        x_ref[...].astype(w1_ref.dtype),
        w1_ref[...],
        preferred_element_type=jnp.float32,
    )
    # bias + ReLU in float32 (VPU fast path on v5e, exact accumulation everywhere)
    h = jnp.maximum(h + b1_ref[...], 0.0)
    # fc2: [TB, H] @ [H, A_pad]
    out = jnp.dot(
        h.astype(w2_ref.dtype),
        w2_ref[...],
        preferred_element_type=jnp.float32,
    )
    o_ref[...] = (out + b2_ref[...]).astype(o_ref.dtype)


def dqn_forward(x, params, *, block_batch=1024, out_dtype=jnp.float32,
                slice_output=True):
    """x: [B, state_size] float. Returns Q-values [B, action_size] (or the
    padded [B_pad, 128] block if slice_output=False)."""
    w1, b1, w2, b2 = params["w1"], params["b1"], params["w2"], params["b2"]
    A = params["action_size"]
    B, S = x.shape
    H = w1.shape[1]
    a_pad = w2.shape[1]

    sublane = 16 if w1.dtype == jnp.bfloat16 else 8
    tb, b_pad = _pick_tile(B, block_batch, sublane)
    x_p = jnp.pad(x, ((0, b_pad - B), (0, 0))) if b_pad != B else x

    wbytes = jnp.dtype(w1.dtype).itemsize
    flops = 2 * b_pad * (S * H + H * a_pad)
    bytes_accessed = int(
        b_pad * S * jnp.dtype(x_p.dtype).itemsize
        + (S * H + H * a_pad) * wbytes
        + (H + a_pad) * 4
        + b_pad * a_pad * jnp.dtype(out_dtype).itemsize
    )

    out = pl.pallas_call(
        dqn_kernel,
        out_shape=jax.ShapeDtypeStruct((b_pad, a_pad), out_dtype),
        grid_spec=pltpu.PrefetchScalarGridSpec(
            num_scalar_prefetch=0,
            grid=(b_pad // tb,),
            in_specs=[
                pl.BlockSpec((tb, S), lambda i: (i, 0)),      # x tile (pipelined)
                pl.BlockSpec((S, H), lambda i: (0, 0)),       # W1 (VMEM resident)
                pl.BlockSpec((1, H), lambda i: (0, 0)),       # b1
                pl.BlockSpec((H, a_pad), lambda i: (0, 0)),   # W2 (padded, resident)
                pl.BlockSpec((1, a_pad), lambda i: (0, 0)),   # b2 (padded)
            ],
            out_specs=pl.BlockSpec((tb, a_pad), lambda i: (i, 0)),
        ),
        compiler_params=pltpu.CompilerParams(
            dimension_semantics=("parallel",),  # megacore split on v7x
        ),
        cost_estimate=pl.CostEstimate(
            flops=flops, transcendentals=0, bytes_accessed=bytes_accessed
        ),
    )(x_p, w1, b1, w2, b2)
    return out[:B, :A] if slice_output else out


# ---------------------------------------------------------------------------
# One-hot fast path: x = one_hot(state_ids). Only the int32 ids are DMA'd
# ([tb, 1] VMEM block); the one-hot matrix is built on-chip with a vectorized
# iota-compare, so there is no [B, S] input traffic and no per-row gather loop.
# ---------------------------------------------------------------------------
def dqn_onehot_kernel(ids_ref, w1_ref, b1_ref, w2_ref, b2_ref, o_ref):
    tb = o_ref.shape[0]
    S = w1_ref.shape[0]
    ids = ids_ref[...]                                       # [tb, 1] int32
    onehot = jax.lax.broadcasted_iota(jnp.int32, (tb, S), 1) == ids
    # Tiny K=S matmul performs the W1 row gather on the MXU (f32 accumulation).
    h = jnp.dot(
        onehot.astype(w1_ref.dtype),
        w1_ref[...],
        preferred_element_type=jnp.float32,
    )
    h = jnp.maximum(h + b1_ref[...], 0.0)
    out = jnp.dot(
        h.astype(w2_ref.dtype),
        w2_ref[...],
        preferred_element_type=jnp.float32,
    )
    o_ref[...] = (out + b2_ref[...]).astype(o_ref.dtype)


def dqn_forward_onehot(state_ids, params, *, block_batch=256,
                       out_dtype=jnp.float32, slice_output=True):
    """state_ids: [B] int; ≡ dqn_forward(one_hot(state_ids, S), params)."""
    w1, b1, w2, b2 = params["w1"], params["b1"], params["w2"], params["b2"]
    A = params["action_size"]
    B = state_ids.shape[0]
    S, H = w1.shape
    a_pad = w2.shape[1]

    sublane = 16 if w1.dtype == jnp.bfloat16 else 8
    tb, b_pad = _pick_tile(B, block_batch, sublane)
    # Padded ids are 0 (gather real row 0); harmless because padded rows are
    # never read back (sliced away / ignored by the caller).
    ids_p = jnp.pad(state_ids.astype(jnp.int32), (0, b_pad - B)).reshape(b_pad, 1)

    wbytes = jnp.dtype(w1.dtype).itemsize
    flops = 2 * b_pad * (S * H + H * a_pad)
    bytes_accessed = int(
        4 * b_pad
        + (S * H + H * a_pad) * wbytes
        + (H + a_pad) * 4
        + b_pad * a_pad * jnp.dtype(out_dtype).itemsize
    )

    out = pl.pallas_call(
        dqn_onehot_kernel,
        out_shape=jax.ShapeDtypeStruct((b_pad, a_pad), out_dtype),
        grid_spec=pltpu.PrefetchScalarGridSpec(
            num_scalar_prefetch=0,
            grid=(b_pad // tb,),
            in_specs=[
                pl.BlockSpec((tb, 1), lambda i: (i, 0)),      # ids tile (tiny DMA)
                pl.BlockSpec((S, H), lambda i: (0, 0)),       # W1 (VMEM resident)
                pl.BlockSpec((1, H), lambda i: (0, 0)),       # b1
                pl.BlockSpec((H, a_pad), lambda i: (0, 0)),   # W2 (padded, resident)
                pl.BlockSpec((1, a_pad), lambda i: (0, 0)),   # b2 (padded)
            ],
            out_specs=pl.BlockSpec((tb, a_pad), lambda i: (i, 0)),
        ),
        compiler_params=pltpu.CompilerParams(
            dimension_semantics=("parallel",),
        ),
        cost_estimate=pl.CostEstimate(
            flops=flops, transcendentals=0, bytes_accessed=bytes_accessed
        ),
    )(ids_p, w1, b1, w2, b2)
    return out[:B, :A] if slice_output else out


# ---------------------------------------------------------------------------
# Rollout/action-selection shortcut: Q_table = relu(W1 + b1) @ W2 + b2 is
# state-independent per parameter set (FrozenLake-scale S), so recompute it
# once per weight update; per-step Q lookup is then q_table[state_ids] with no
# kernel launch at all. Use the batched paths above when training needs h.
# ---------------------------------------------------------------------------
def _q_table_kernel(w1_ref, b1_ref, w2_ref, b2_ref, o_ref):
    h = jnp.maximum(w1_ref[...].astype(jnp.float32) + b1_ref[...], 0.0)
    out = jnp.dot(
        h.astype(w2_ref.dtype),
        w2_ref[...],
        preferred_element_type=jnp.float32,
    )
    o_ref[...] = (out + b2_ref[...]).astype(o_ref.dtype)


def precompute_q_table(params):
    """Returns Q_table [S, action_size] with Q_table[s] = DQN(one_hot(s))."""
    w1, b1, w2, b2 = params["w1"], params["b1"], params["w2"], params["b2"]
    S, _ = w1.shape
    a_pad = w2.shape[1]
    qt = pl.pallas_call(
        _q_table_kernel,
        out_shape=jax.ShapeDtypeStruct((S, a_pad), jnp.float32),
    )(w1, b1, w2, b2)
    return qt[:, : params["action_size"]]


def init_dqn_params(key, state_size, action_size, hidden_size=256):
    """Deterministic PyTorch-style init: U(-1/sqrt(fan_in), 1/sqrt(fan_in))."""
    k1, k2, k3, k4 = jax.random.split(key, 4)
    bound1 = 1.0 / math.sqrt(state_size)
    bound2 = 1.0 / math.sqrt(hidden_size)
    w1 = jax.random.uniform(k1, (state_size, hidden_size), jnp.float32, -bound1, bound1)
    b1 = jax.random.uniform(k2, (1, hidden_size), jnp.float32, -bound1, bound1)
    w2 = jax.random.uniform(k3, (hidden_size, action_size), jnp.float32, -bound2, bound2)
    b2 = jax.random.uniform(k4, (1, action_size), jnp.float32, -bound2, bound2)
    return w1, b1, w2, b2


if __name__ == "__main__":
    # FrozenLake 4x4: observation_space.n = 16 states, action_space.n = 4 actions.
    # TODO(synk): the gym RewardWrapper / replay buffer / optimizer loop are
    # host-side RL plumbing, not forward-pass kernel work.
    state_size = 16
    action_size = 4
    hidden_size = 256
    batch = 2

    key = jax.random.PRNGKey(0)
    kp, kx = jax.random.split(key)
    w1, b1, w2, b2 = init_dqn_params(kp, state_size, action_size, hidden_size)

    # Pad/cast ONCE (canonical layout); reuse across every forward call.
    params_f32 = prepare_params(w1, b1, w2, b2)
    params_bf16 = prepare_params(w1, b1, w2, b2, weight_dtype=jnp.bfloat16)

    # Typical DQN input for FrozenLake: one-hot encoded state vectors.
    state_ids = jax.random.randint(kx, (batch,), 0, state_size)
    x = jax.nn.one_hot(state_ids, state_size, dtype=jnp.float32)

    # Reference (same math as the PyTorch module), float32.
    ref = jnp.maximum(x @ w1 + b1, 0.0) @ w2 + b2

    # 1) Dense path (general nn.Linear semantics), float32 weights: exact.
    q_dense = jax.block_until_ready(dqn_forward(x, params_f32))
    assert q_dense.shape == (batch, action_size)
    assert jnp.allclose(q_dense, ref, atol=1e-5, rtol=1e-5)

    # 2) One-hot fast path (ids only; one-hot built on-chip), float32 weights.
    q_oh = jax.block_until_ready(dqn_forward_onehot(state_ids, params_f32))
    assert q_oh.shape == (batch, action_size)
    assert jnp.allclose(q_oh, ref, atol=1e-5, rtol=1e-5)

    # 3) bf16-weight MXU path (v5e/v6e/v7x), f32 bias/ReLU/accumulation.
    q_bf16 = jax.block_until_ready(dqn_forward(x, params_bf16))
    assert jnp.allclose(q_bf16, ref, atol=5e-2, rtol=5e-2)

    # 4) Precomputed Q-table shortcut for rollout / action selection.
    q_table = precompute_q_table(params_f32)
    q_lut = jax.block_until_ready(q_table[state_ids])
    assert jnp.allclose(q_lut, ref, atol=1e-5, rtol=1e-5)

    # 5) Multi-tile grid path (batch padding + "parallel" batch axis).
    big_ids = jax.random.randint(kx, (43,), 0, state_size)
    big_x = jax.nn.one_hot(big_ids, state_size, dtype=jnp.float32)
    big_ref = jnp.maximum(big_x @ w1 + b1, 0.0) @ w2 + b2
    q_big = jax.block_until_ready(dqn_forward(big_x, params_f32, block_batch=16))
    assert q_big.shape == (43, action_size)
    assert jnp.allclose(q_big, big_ref, atol=1e-5, rtol=1e-5)
    q_big_oh = jax.block_until_ready(
        dqn_forward_onehot(big_ids, params_f32, block_batch=16)
    )
    assert jnp.allclose(q_big_oh, big_ref, atol=1e-5, rtol=1e-5)

    print("KERNEL_OK")
</pallas_src>

<mosaic_0001>
module attributes {stable_mosaic.version = 11 : i64} {
  func.func @dqn_kernel(%arg0: i32, %arg1: memref<8x16xf32, #tpu.memory_space<vmem>>, %arg2: memref<16x256xf32, #tpu.memory_space<vmem>>, %arg3: memref<1x256xf32, #tpu.memory_space<vmem>>, %arg4: memref<256x128xf32, #tpu.memory_space<vmem>>, %arg5: memref<1x128xf32, #tpu.memory_space<vmem>>, %arg6: memref<8x128xf32, #tpu.memory_space<vmem>>) attributes {dimension_semantics = [#tpu.dimension_semantics<parallel>], iteration_bounds = array<i64: 1>, scalar_prefetch = 0 : i64, scratch_operands = 0 : i64, tpu.core_type = #tpu.core_type<tc>, window_params = [{transform_indices = @transform_0, window_bounds = array<i64: 8, 16>}, {pipeline_mode = #tpu.pipeline_mode<synchronous>, transform_indices = @transform_1, window_bounds = array<i64: 16, 256>}, {pipeline_mode = #tpu.pipeline_mode<synchronous>, transform_indices = @transform_2, window_bounds = array<i64: 1, 256>}, {pipeline_mode = #tpu.pipeline_mode<synchronous>, transform_indices = @transform_3, window_bounds = array<i64: 256, 128>}, {pipeline_mode = #tpu.pipeline_mode<synchronous>, transform_indices = @transform_4, window_bounds = array<i64: 1, 128>}, {transform_indices = @transform_5, window_bounds = array<i64: 8, 128>}]} {
    %c0 = arith.constant 0 : index
    %c0_0 = arith.constant 0 : index
    %0 = vector.load %arg1[%c0, %c0_0] : memref<8x16xf32, #tpu.memory_space<vmem>>, vector<8x16xf32>
    %c0_1 = arith.constant 0 : index
    %c0_2 = arith.constant 0 : index
    %1 = vector.load %arg2[%c0_1, %c0_2] : memref<16x256xf32, #tpu.memory_space<vmem>>, vector<16x256xf32>
    %cst = arith.constant dense<0.000000e+00> : vector<8x256xf32>
    %2 = tpu.matmul %0, %1, %cst {dimension_numbers = #tpu.dot_dimension_numbers<[1], [0], [0], [1], [0, 0, 1, 1], [], []>} : vector<8x16xf32>, vector<16x256xf32>, vector<8x256xf32> -> vector<8x256xf32>
    %c0_3 = arith.constant 0 : index
    %c0_4 = arith.constant 0 : index
    %3 = vector.load %arg3[%c0_3, %c0_4] : memref<1x256xf32, #tpu.memory_space<vmem>>, vector<1x256xf32>
    %4 = vector.broadcast %3 : vector<1x256xf32> to vector<8x256xf32>
    %5 = arith.addf %2, %4 : vector<8x256xf32>
    %cst_5 = arith.constant 0.000000e+00 : f32
    %6 = vector.broadcast %cst_5 : f32 to vector<8x256xf32>
    %7 = arith.maximumf %5, %6 : vector<8x256xf32>
    %c0_6 = arith.constant 0 : index
    %c0_7 = arith.constant 0 : index
    %8 = vector.load %arg4[%c0_6, %c0_7] : memref<256x128xf32, #tpu.memory_space<vmem>>, vector<256x128xf32>
    %cst_8 = arith.constant dense<0.000000e+00> : vector<8x128xf32>
    %9 = tpu.matmul %7, %8, %cst_8 {dimension_numbers = #tpu.dot_dimension_numbers<[1], [0], [0], [1], [0, 0, 1, 1], [], []>} : vector<8x256xf32>, vector<256x128xf32>, vector<8x128xf32> -> vector<8x128xf32>
    %c0_9 = arith.constant 0 : index
    %c0_10 = arith.constant 0 : index
    %10 = vector.load %arg5[%c0_9, %c0_10] : memref<1x128xf32, #tpu.memory_space<vmem>>, vector<1x128xf32>
    %11 = vector.broadcast %10 : vector<1x128xf32> to vector<8x128xf32>
    %12 = arith.addf %9, %11 : vector<8x128xf32>
    %c0_11 = arith.constant 0 : index
    %c0_12 = arith.constant 0 : index
    %13 = vector.load %arg6[%c0_11, %c0_12] : memref<8x128xf32, #tpu.memory_space<vmem>>, vector<8x128xf32>
    tpu.vector_store %arg6[%c0_11, %c0_12], %12 {strides = array<i32>} : memref<8x128xf32, #tpu.memory_space<vmem>>, vector<8x128xf32>,
    return
  }
  func.func @transform_0(%arg0: i32) -> (i32, i32) {
    %c0_i32 = arith.constant 0 : i32
    %c0_i32_0 = arith.constant 0 : i32
    return %arg0, %c0_i32 : i32, i32
  }
  func.func @transform_1(%arg0: i32) -> (i32, i32) {
    %c0_i32 = arith.constant 0 : i32
    %c0_i32_0 = arith.constant 0 : i32
    %c0_i32_1 = arith.constant 0 : i32
    return %c0_i32, %c0_i32_0 : i32, i32
  }
  func.func @transform_2(%arg0: i32) -> (i32, i32) {
    %c0_i32 = arith.constant 0 : i32
    %c0_i32_0 = arith.constant 0 : i32
    %c0_i32_1 = arith.constant 0 : i32
    return %c0_i32, %c0_i32_0 : i32, i32
  }
  func.func @transform_3(%arg0: i32) -> (i32, i32) {
    %c0_i32 = arith.constant 0 : i32
    %c0_i32_0 = arith.constant 0 : i32
    %c0_i32_1 = arith.constant 0 : i32
    return %c0_i32, %c0_i32_0 : i32, i32
  }
  func.func @transform_4(%arg0: i32) -> (i32, i32) {
    %c0_i32 = arith.constant 0 : i32
    %c0_i32_0 = arith.constant 0 : i32
    %c0_i32_1 = arith.constant 0 : i32
    return %c0_i32, %c0_i32_0 : i32, i32
  }
  func.func @transform_5(%arg0: i32) -> (i32, i32) {
    %c0_i32 = arith.constant 0 : i32
    %c0_i32_0 = arith.constant 0 : i32
    return %arg0, %c0_i32 : i32, i32
  }
}

</mosaic_0001>

<bundles_post_ra>
// kernel: tpu_custom_call.1
= control target key start
LH: loop header
LB: loop body
LE: loop exit
PB: predicated region body
PF: predicated region fallthrough
CT: control target
= control target key end

     0   :  { %10 = vsyncpa [#allocation3], 0  ;;  %s469_s0 = inlined_call_operand.hbm [shape: f32[8,16], index: 0, kind: input, shape index: {}]   ;;  %s470_s1 = inlined_call_operand.hbm [shape: f32[16,256], index: 1, kind: input, shape index: {}]   ;;  %s471_s2 = inlined_call_operand.vmem [shape: f32[1,256], index: 2, kind: input, shape index: {}]   ;;  %s472_s3 = inlined_call_operand.hbm [shape: f32[256,128], index: 3, kind: input, shape index: {}]   ;;  %s473_s4 = inlined_call_operand.vmem [shape: f32[1,128], index: 4, kind: input, shape index: {}]   ;;  %s474_s5 = inlined_call_operand.hbm [shape: f32[8,128], index: 5, kind: output, shape index: {}]  }
   0x1   :  { %11 = vsyncpa [#allocation6], 0 }
   0x2   :  { %12 = vsyncpa [#allocation4], 0  ;;  %s412_s18 = smov [#allocation5]  }
   0x3   :  { %s28_s19 = sshll.u32 %s412_s18, 4  ;;  %s29_s19 = int_to_ptr.vmem [resolvable:$true] %s28_s19 }
   0x4   :  { %s334_s20 = scalar_lea.vmem %s29_s19, 512  ;;  %p339_p1 = scmp.lt.s32.totalorder %s29_s19, %s29_s19 }
   0x5   :  { %p335_p0 = scmp.ne.s32.totalorder %s29_s19, %s334_s20  ;;  %p340_p2 = scmp.lt.s32.totalorder %s334_s20, %s334_s20 }
   0x7   :  { %p341_p3 = por %p340_p2, %p339_p1 }
   0x9   :  { %p342_p4 = pnand %p341_p3, %p335_p0 }
   0xb   :  { %345 = shalt.err (!%p342_p4)
}
   0xc   :  { %s413_s21 = smov 256   ;;  %s414_s22 = smov 16  }
   0xd   :  { %34 = dma.hbm_to_vmem [thread:$0]  %s470_s1, 512, %s29_s19, [#allocation6], %s413_s21, %s413_s21, %s414_s22  }
   0xe   :  { %s415_s25 = smov [#allocation2]   ;;  %s416_s27 = smov [#allocation7]  }
   0xf   :  { %s19_s26 = sshll.u32 %s415_s25, 4  ;;  %s42_s28 = sshll.u32 %s416_s27, 4  ;;  %s20_s26 = int_to_ptr.vmem [resolvable:$true] %s19_s26  ;;  %s43_s28 = int_to_ptr.vmem [resolvable:$true] %s42_s28 }
  0x10   :  { %s354_s29 = scalar_lea.vmem %s20_s26, 128  ;;  %p359_p6 = scmp.lt.s32.totalorder %s20_s26, %s20_s26 }
  0x11   :  { %p355_p5 = scmp.ne.s32.totalorder %s20_s26, %s354_s29  ;;  %p360_p7 = scmp.lt.s32.totalorder %s354_s29, %s354_s29 }
  0x13   :  { %p361_p8 = por %p360_p7, %p359_p6 }
  0x15   :  { %p362_p9 = pnand %p361_p8, %p355_p5 }
  0x17   :  { %365 = shalt.err (!%p362_p9)
}
  0x18   :  { %22 = dma.hbm_to_vmem [thread:$0]  %s469_s0, 128, %s20_s26, [#allocation3]  }
  0x19   :  { %s374_s7 = scalar_lea.vmem %s43_s28, 4096  ;;  %p379_p11 = scmp.lt.s32.totalorder %s43_s28, %s43_s28 }
  0x1a   :  { %p375_p10 = scmp.ne.s32.totalorder %s43_s28, %s374_s7  ;;  %p380_p12 = scmp.lt.s32.totalorder %s374_s7, %s374_s7 }
  0x1c   :  { %p381_p13 = por %p380_p12, %p379_p11 }
  0x1e   :  { %p382_p0 = pnand %p381_p13, %p375_p10 }
  0x20   :  { %385 = shalt.err (!%p382_p0)
}
  0x21   :  { %s417_s1 = smov 128   ;;  %s418_s8 = smov 8  }
  0x22   :  { %48 = dma.hbm_to_vmem [thread:$0]  %s472_s3, 4096, %s43_s28, [#allocation6], %s417_s1, %s417_s1, %s418_s8  }
  0x23   :  { %406 = dma.done.wait [#allocation3], 128  }
  0x24   :  { %407 = vsyncadd [#allocation3], 4294967168 }
  0x25   :  { %408 = dma.done.wait [#allocation6], 4608  }
  0x26   :  { %409 = vsyncadd [#allocation6], 4294962688  ;;  %v419_v0 = vmov 0.0   ;;  %v64_v1 = vld [vmem:[#allocation5 + $0x18] sm:$0xff]  ;;  %v63_v2 = vld [vmem:[#allocation5 + $0x10] sm:$0xff]  ;;  %vm77_vm0 = vcmask 130048   ;;  %v67_v38 = vlaneseq }
  0x27   :  { %145 = vmatprep.mubr.f32.mxu0 %v419_v0  ;;  %v62_v3 = vld [vmem:[#allocation5 + $0x8] sm:$0xff]  ;;  %109 = vmatprep.subr.mxu0 %v64_v1  ;;  %v61_v4 = vld [vmem:[#allocation5] sm:$0xff]  ;;  %v60_v5 = vld [vmem:[#allocation2] sm:$0xff]  ;;  %s420_s13 = smov [#allocation8]  }
  0x28   :  { %v185_v6 = vld [vmem:[#allocation7 + $0xf8] sm:$0xff]  ;;  %110 = vmatpush1.msra.mxu0 %v63_v2  ;;  %v184_v8 = vld [vmem:[#allocation7 + $0xf0] sm:$0xff]  ;;  %v183_v10 = vld [vmem:[#allocation7 + $0xe8] sm:$0xff]  ;;  %v68_v39 = vshrl.u32 %v67_v38, 7  ;;  %s270_s14 = sshll.u32 %s420_s13, 4  ;;  %s271_s14 = int_to_ptr.vmem [resolvable:$true] %s270_s14 }
  0x29   :  { %282 = vmatprep.subr.mxu1 %v185_v6  ;;  %v169_v7 = vld [vmem:[#allocation7 + $0x78] sm:$0xff]  ;;  %v168_v9 = vld [vmem:[#allocation7 + $0x70] sm:$0xff]  ;;  %111 = vmatprep.subr.mxu0 %v62_v3  ;;  %v167_v11 = vld [vmem:[#allocation7 + $0x68] sm:$0xff]  ;;  %p391_p2 = scmp.lt.s32.totalorder %s271_s14, %s271_s14 }
  0x2a   :  { %283 = vmatpush3.msra.mxu1 %v169_v7  ;;  %112 = vmatpush1.msra.mxu0 %v61_v4  ;;  %v182_v12 = vld [vmem:[#allocation7 + $0xe0] sm:$0xff]  ;;  %v181_v14 = vld [vmem:[#allocation7 + $0xd8] sm:$0xff]  ;;  %v180_v16 = vld [vmem:[#allocation7 + $0xd0] sm:$0xff]  ;;  %v69_v40 = vsub.s32 0, %v68_v39  ;;  %v73_v42 = vsub.s32 1, %v68_v39 }
  0x2b   :  { %284 = vmatprep.subr.mxu1 %v184_v8  ;;  %280 = vmatmul.mubr.msk.f32.vlgmr.msra.gmra.mxu0 %vm77_vm0, %v60_v5  ;;  %v166_v13 = vld [vmem:[#allocation7 + $0x60] sm:$0xff]  ;;  %v165_v15 = vld [vmem:[#allocation7 + $0x58] sm:$0xff]  ;;  %v164_v17 = vld [vmem:[#allocation7 + $0x50] sm:$0xff] }
  0x2c   :  { %285 = vmatpush3.msra.mxu1 %v168_v9  ;;  %v179_v18 = vld [vmem:[#allocation7 + $0xc8] sm:$0xff]  ;;  %v178_v20 = vld [vmem:[#allocation7 + $0xc0] sm:$0xff]  ;;  %v177_v22 = vld [vmem:[#allocation7 + $0xb8] sm:$0xff] }
  0x2d   :  { %286 = vmatprep.subr.mxu1 %v183_v10  ;;  %v163_v19 = vld [vmem:[#allocation7 + $0x48] sm:$0xff]  ;;  %v162_v21 = vld [vmem:[#allocation7 + $0x40] sm:$0xff]  ;;  %v161_v23 = vld [vmem:[#allocation7 + $0x38] sm:$0xff] }
  0x2e   :  { %287 = vmatpush3.msra.mxu1 %v167_v11  ;;  %v176_v24 = vld [vmem:[#allocation7 + $0xb0] sm:$0xff]  ;;  %v175_v26 = vld [vmem:[#allocation7 + $0xa8] sm:$0xff]  ;;  %v174_v28 = vld [vmem:[#allocation7 + $0xa0] sm:$0xff] }
  0x2f   :  { %288 = vmatprep.subr.mxu1 %v182_v12  ;;  %v160_v25 = vld [vmem:[#allocation7 + $0x30] sm:$0xff]  ;;  %v159_v27 = vld [vmem:[#allocation7 + $0x28] sm:$0xff]  ;;  %v158_v29 = vld [vmem:[#allocation7 + $0x20] sm:$0xff] }
  0x30   :  { %289 = vmatpush3.msra.mxu1 %v166_v13  ;;  %v173_v30 = vld [vmem:[#allocation7 + $0x98] sm:$0xff]  ;;  %v172_v32 = vld [vmem:[#allocation7 + $0x90] sm:$0xff]  ;;  %v171_v34 = vld [vmem:[#allocation7 + $0x88] sm:$0xff] }
  0x31   :  { %290 = vmatprep.subr.mxu1 %v181_v14  ;;  %v157_v31 = vld [vmem:[#allocation7 + $0x18] sm:$0xff]  ;;  %v156_v33 = vld [vmem:[#allocation7 + $0x10] sm:$0xff]  ;;  %v155_v35 = vld [vmem:[#allocation7 + $0x8] sm:$0xff] }
  0x32   :  { %291 = vmatpush3.msra.mxu1 %v165_v15  ;;  %v170_v36 = vld [vmem:[#allocation7 + $0x80] sm:$0xff]  ;;  %v65_v41 = vld [vmem:[%s471_s2] sm:$0x3]  ;;  %s386_s2 = scalar_lea.vmem %s271_s14, 128 }
  0x33   :  { %292 = vmatprep.subr.mxu1 %v180_v16  ;;  %v154_v37 = vld [vmem:[#allocation7] sm:$0xff]  ;;  %v70_v43 = vrot.slane %v65_v41, %v69_v40  ;;  %v74_v44 = vrot.slane %v65_v41, %v73_v42  ;;  %v281_v52 = vld [vmem:[%s473_s4] ss:$0 sm:$0xff]  ;;  %p387_p1 = scmp.ne.s32.totalorder %s271_s14, %s386_s2  ;;  %p392_p3 = scmp.lt.s32.totalorder %s386_s2, %s386_s2 }
  0x34   :  { %293 = vmatpush3.msra.mxu1 %v164_v17 }
  0x35   :  { %294 = vmatprep.subr.mxu1 %v179_v18  ;;  %p393_p4 = por %p392_p3, %p391_p2 }
  0x36   :  { %295 = vmatpush3.msra.mxu1 %v163_v19 }
  0x37   :  { %296 = vmatprep.subr.mxu1 %v178_v20  ;;  %p394_p5 = pnand %p393_p4, %p387_p1 }
  0x38   :  { %297 = vmatpush3.msra.mxu1 %v162_v21 }
  0x39   :  { %298 = vmatprep.subr.mxu1 %v177_v22 }
  0x3a   :  { %299 = vmatpush3.msra.mxu1 %v161_v23 }
  0x3b   :  { %300 = vmatprep.subr.mxu1 %v176_v24 }
  0x3c   :  { %301 = vmatpush3.msra.mxu1 %v160_v25 }
  0x3d   :  { %302 = vmatprep.subr.mxu1 %v175_v26 }
  0x3e   :  { %303 = vmatpush3.msra.mxu1 %v159_v27 }
  0x3f   :  { %304 = vmatprep.subr.mxu1 %v174_v28 }
  0x40   :  { %305 = vmatpush3.msra.mxu1 %v158_v29 }
  0x41   :  { %306 = vmatprep.subr.mxu1 %v173_v30 }
  0x42   :  { %307 = vmatpush3.msra.mxu1 %v157_v31 }
  0x43   :  { %308 = vmatprep.subr.mxu1 %v172_v32 }
  0x44   :  { %309 = vmatpush3.msra.mxu1 %v156_v33 }
  0x45   :  { %310 = vmatprep.subr.mxu1 %v171_v34 }
  0x46   :  { %311 = vmatpush3.msra.mxu1 %v155_v35 }
  0x47   :  { %312 = vmatprep.subr.mxu1 %v170_v36 }
  0x48   :  { %313 = vmatpush3.msra.mxu1 %v154_v37 }
  0xeb   :  { %v147_v45 = vpop.f32.mrf.mxu0 }
  0xec   :  { %v148_v46 = vadd.f32 %v147_v45, %v70_v43 }
  0xed   :  { %v149_v47 = vpop.f32.mrf.mxu0 }
  0xee   :  { %v150_v48 = vadd.f32 %v149_v47, %v74_v44  ;;  %v152_v50 = vmax.f32 %v148_v46, 0.0 }
  0xf0   :  { %v153_v49 = vmax.f32 %v150_v48, 0.0 }
  0xf2   :  { %257 = vmatprep.mubr.f32.mxu1 %v153_v49 }
  0xf3   :  { %258 = vmatmul.mubr.f32.vlgmr.msra.gmra.mxu1 %v152_v50 }
 0x1b3   :  { %v314_v51 = vpop.f32.mrf.mxu1 }
 0x1b5   :  { %v315_v53 = vpop.f32.mrf.mxu1 }
 0x1b6   :  { %v316_v54 = vadd.f32 %v315_v53, %v314_v51 }
 0x1b8   :  { %v260_v55 = vadd.f32 %v316_v54, %v281_v52 }
 0x1ba   :  { %263 = vst [vmem:[#allocation8] sm:$0xff] %v260_v55 }
 0x1bb   :  { %397 = shalt.err (!%p394_p5)
}
 0x1bc   :  { %273 = dma.vmem_to_hbm [thread:$0]  %s271_s14, 128, %s474_s5, [#allocation4]  }
 0x1bd   :  { %410 = dma.done.wait [#allocation4], 128  }
 0x1be   :  { %411 = vsyncadd [#allocation4], 4294967168 }
 0x1bf   :  { %277 = vsyncpa [#allocation3], 1 }
 0x1c0   :  { %278 = vsyncpa [#allocation6], 1 }
 0x1c1   :  { %279 = vsyncpa [#allocation4], 1 }

</bundles_post_ra>
